<compile_context>
chip_gen: v6e
topology: v6e:2x2x1
jax: 0.10.0
libtpu: 0.0.40
codegen_flags: <defaults>
</compile_context>

<pallas_src>
import functools

import jax
import jax.numpy as jnp
from jax.experimental import pallas as pl
from jax.experimental.pallas import tpu as pltpu


def _subpixel1d_kernel(x_ref, e_ref, o_ref, *, scale):
    # x_ref: (1, C, n, TL)   e_ref: (n, TL, TL*n)   o_ref: (1, C, TL*n)
    # out[c, l*n + k] = x[c, k, l]  via n small one-hot "dilation" matmuls.
    acc = jnp.dot(x_ref[0, :, 0, :], e_ref[0],
                  preferred_element_type=jnp.float32)
    for k in range(1, scale):                      # static; scale is small
        acc = acc + jnp.dot(x_ref[0, :, k, :], e_ref[k],
                            preferred_element_type=jnp.float32)
    o_ref[0] = acc.astype(o_ref.dtype)


def _pick_tile(L, n):
    """Tile along L: a multiple of 128 that divides L, capping TL*n at ~512
    lanes (TL <= 256) so the per-tile interleave matmul stays cheaper than the
    HBM traffic on every chip generation."""
    if L > 128 and L % 128 == 0:
        tl = max(128, min(L, (512 // n) // 128 * 128))
        while L % tl:
            tl -= 128
        return tl
    return L            # small (or non-128-divisible) lengths: one block


def subpixel1d(x, scale_factor):
    """x: [B, C*n, L] -> [B, C, L*n], identical to PyTorch SubPixel1D.forward."""
    B, CN, L = x.shape
    n = scale_factor
    assert CN % n == 0, "channel dim must be divisible by scale_factor"
    C = CN // n
    TL = _pick_tile(L, n)
    TLN = TL * n
    LN = L * n

    # Free (contiguous) reshape: x4[b, c, k, l] == x[b, c*n + k, l].
    x4 = x.reshape(B, C, n, L)

    # One-hot values (0/1) are exact in bf16; accumulate in f32 -> exact copy.
    e_dtype = jnp.bfloat16 if x.dtype == jnp.bfloat16 else jnp.float32

    # Tile-local one-hot interleave matrix:  E[k, l, j] = 1  iff  j == l*n + k.
    E = (jnp.arange(TLN)[None, None, :]
         == (jnp.arange(TL)[None, :, None] * n + jnp.arange(n)[:, None, None])
         ).astype(e_dtype)                          # (n, TL, TL*n), <= ~1 MiB

    kernel = functools.partial(_subpixel1d_kernel, scale=n)
    return pl.pallas_call(
        kernel,
        out_shape=jax.ShapeDtypeStruct((B, C, LN), x.dtype),
        grid_spec=pltpu.PrefetchScalarGridSpec(
            num_scalar_prefetch=0,
            grid=(B, L // TL),
            in_specs=[
                # one batch, all channels, all sub-phases, one L tile
                pl.BlockSpec((1, C, n, TL), lambda b, t: (b, 0, 0, t)),
                # small constant, same block every step -> loaded once, resident
                pl.BlockSpec((n, TL, TLN), lambda b, t: (0, 0, 0)),
            ],
            out_specs=pl.BlockSpec((1, C, TLN), lambda b, t: (b, 0, t)),
        ),
        compiler_params=pltpu.CompilerParams(
            dimension_semantics=("parallel", "parallel"),
            vmem_limit_bytes=32 * 1024 * 1024),
    )(x4, E)


def _subpixel1d_ref(data, n):
    # Direct transcription of the PyTorch forward in jnp (verification only).
    B, CN, L = data.shape
    r = jnp.swapaxes(data, 2, 1)              # (B, L, C*n)
    r = r.reshape(-1, L, CN // n, n)          # (B, L, C, n)
    r = jnp.swapaxes(r, 3, 2)                 # (B, L, n, C)
    r = r.reshape(-1, L * n, CN // n)         # (B, L*n, C)
    return jnp.swapaxes(r, 2, 1)              # (B, C, L*n)


def _check(B, C, n, L, dtype, key):
    x = jax.random.normal(key, (B, C * n, L), dtype=jnp.float32).astype(dtype)
    out = jax.block_until_ready(subpixel1d(x, n))
    ref = _subpixel1d_ref(x, n)
    assert out.shape == (B, C, L * n), out.shape
    assert out.dtype == x.dtype, out.dtype
    assert jnp.allclose(out.astype(jnp.float32), ref.astype(jnp.float32),
                        atol=0.0, rtol=0.0), \
        f"kernel output != reference for B={B} C={C} n={n} L={L} {dtype}"


if __name__ == "__main__":
    key = jax.random.PRNGKey(0)
    k0, k1, k2, k3 = jax.random.split(key, 4)

    # primary small example: input [2, 8, 16] -> output [2, 4, 32]
    _check(B=2, C=4, n=2, L=16, dtype=jnp.float32, key=k0)
    # bf16 path (bf16 one-hot constant, f32 accumulation)
    _check(B=2, C=4, n=2, L=16, dtype=jnp.bfloat16, key=k1)
    # larger scale factor
    _check(B=2, C=3, n=4, L=16, dtype=jnp.float32, key=k2)
    # multi-tile path along L (L divisible by 128 -> TL=128, grid=(2, 3))
    _check(B=2, C=4, n=2, L=384, dtype=jnp.float32, key=k3)

    print("KERNEL_OK")
</pallas_src>

<mosaic_0001>
module attributes {stable_mosaic.version = 11 : i64} {
  func.func @_subpixel1d_kernel(%arg0: i32, %arg1: i32, %arg2: memref<1x4x2x16xf32, #tpu.memory_space<vmem>>, %arg3: memref<2x16x32xf32, #tpu.memory_space<vmem>>, %arg4: memref<1x4x32xf32, #tpu.memory_space<vmem>>) attributes {dimension_semantics = [#tpu.dimension_semantics<parallel>, #tpu.dimension_semantics<parallel>], iteration_bounds = array<i64: 2, 1>, scalar_prefetch = 0 : i64, scratch_operands = 0 : i64, tpu.core_type = #tpu.core_type<tc>, window_params = [{transform_indices = @transform_0, window_bounds = array<i64: 1, 4, 2, 16>}, {pipeline_mode = #tpu.pipeline_mode<synchronous>, transform_indices = @transform_1, window_bounds = array<i64: 2, 16, 32>}, {transform_indices = @transform_2, window_bounds = array<i64: 1, 4, 32>}]} {
    %c0 = arith.constant 0 : index
    %c0_0 = arith.constant 0 : index
    %c0_1 = arith.constant 0 : index
    %c0_2 = arith.constant 0 : index
    %0 = vector.load %arg2[%c0, %c0_0, %c0_1, %c0_2] : memref<1x4x2x16xf32, #tpu.memory_space<vmem>>, vector<1x4x1x16xf32>
    %1 = vector.shape_cast %0 : vector<1x4x1x16xf32> to vector<4x16xf32>
    %c0_3 = arith.constant 0 : index
    %c0_4 = arith.constant 0 : index
    %c0_5 = arith.constant 0 : index
    %2 = vector.load %arg3[%c0_3, %c0_4, %c0_5] : memref<2x16x32xf32, #tpu.memory_space<vmem>>, vector<1x16x32xf32>
    %3 = vector.shape_cast %2 : vector<1x16x32xf32> to vector<16x32xf32>
    %cst = arith.constant dense<0.000000e+00> : vector<4x32xf32>
    %4 = tpu.matmul %1, %3, %cst {dimension_numbers = #tpu.dot_dimension_numbers<[1], [0], [0], [1], [0, 0, 1, 1], [], []>} : vector<4x16xf32>, vector<16x32xf32>, vector<4x32xf32> -> vector<4x32xf32>
    %c0_6 = arith.constant 0 : index
    %c0_7 = arith.constant 0 : index
    %c1 = arith.constant 1 : index
    %c0_8 = arith.constant 0 : index
    %5 = vector.load %arg2[%c0_6, %c0_7, %c1, %c0_8] : memref<1x4x2x16xf32, #tpu.memory_space<vmem>>, vector<1x4x1x16xf32>
    %6 = vector.shape_cast %5 : vector<1x4x1x16xf32> to vector<4x16xf32>
    %c1_9 = arith.constant 1 : index
    %c0_10 = arith.constant 0 : index
    %c0_11 = arith.constant 0 : index
    %7 = vector.load %arg3[%c1_9, %c0_10, %c0_11] : memref<2x16x32xf32, #tpu.memory_space<vmem>>, vector<1x16x32xf32>
    %8 = vector.shape_cast %7 : vector<1x16x32xf32> to vector<16x32xf32>
    %cst_12 = arith.constant dense<0.000000e+00> : vector<4x32xf32>
    %9 = tpu.matmul %6, %8, %cst_12 {dimension_numbers = #tpu.dot_dimension_numbers<[1], [0], [0], [1], [0, 0, 1, 1], [], []>} : vector<4x16xf32>, vector<16x32xf32>, vector<4x32xf32> -> vector<4x32xf32>
    %10 = arith.addf %4, %9 : vector<4x32xf32>
    %c0_13 = arith.constant 0 : index
    %c0_14 = arith.constant 0 : index
    %c0_15 = arith.constant 0 : index
    %11 = vector.load %arg4[%c0_13, %c0_14, %c0_15] : memref<1x4x32xf32, #tpu.memory_space<vmem>>, vector<1x4x32xf32>
    %12 = vector.shape_cast %11 : vector<1x4x32xf32> to vector<4x32xf32>
    %13 = vector.shape_cast %10 : vector<4x32xf32> to vector<1x4x32xf32>
    tpu.vector_store %arg4[%c0_13, %c0_14, %c0_15], %13 {strides = array<i32>} : memref<1x4x32xf32, #tpu.memory_space<vmem>>, vector<1x4x32xf32>,
    return
  }
  func.func @transform_0(%arg0: i32, %arg1: i32) -> (i32, i32, i32, i32) {
    %c0_i32 = arith.constant 0 : i32
    %c0_i32_0 = arith.constant 0 : i32
    %c0_i32_1 = arith.constant 0 : i32
    return %arg0, %c0_i32, %c0_i32_0, %arg1 : i32, i32, i32, i32
  }
  func.func @transform_1(%arg0: i32, %arg1: i32) -> (i32, i32, i32) {
    %c0_i32 = arith.constant 0 : i32
    %c0_i32_0 = arith.constant 0 : i32
    %c0_i32_1 = arith.constant 0 : i32
    %c0_i32_2 = arith.constant 0 : i32
    return %c0_i32, %c0_i32_0, %c0_i32_1 : i32, i32, i32
  }
  func.func @transform_2(%arg0: i32, %arg1: i32) -> (i32, i32, i32) {
    %c0_i32 = arith.constant 0 : i32
    %c0_i32_0 = arith.constant 0 : i32
    return %arg0, %c0_i32, %arg1 : i32, i32, i32
  }
}

</mosaic_0001>

<bundles_post_ra>
// kernel: tpu_custom_call.1
= control target key start
LH: loop header
LB: loop body
LE: loop exit
PB: predicated region body
PF: predicated region fallthrough
CT: control target
= control target key end

     0   :  { %7 = vsyncpa [#allocation3], 0  ;;  %s955_s0 = inlined_call_operand.hbm [shape: f32[2,4,2,16], index: 0, kind: input, shape index: {}]   ;;  %s956_s1 = inlined_call_operand.hbm [shape: f32[2,16,32], index: 1, kind: input, shape index: {}]   ;;  %s957_s2 = inlined_call_operand.hbm [shape: f32[2,4,32], index: 2, kind: output, shape index: {}]  }
   0x1   :  { %9 = vsyncpa [#allocation3 + $0x1], 0 }
   0x2   :  { %10 = vsyncpa [#allocation6], 0 }
   0x3   :  { %11 = vsyncpa [#allocation4], 0 }
   0x4   :  { %13 = vsyncpa [#allocation4 + $0x1], 0  ;;  %s765_s9 = smov 0   ;;  %s767_s10 = smov 0  }
   0x5   :  { %s769_s11 = smov 0   ;;  %s771_s12 = smov 0  }
   0x6   :  { %s773_s13 = smov 0   ;;  %s775_s14 = smov 0  }
   0x7 LB: > { %s483_s15 = sadd.s32 4294967295, %s739_s14   ;;  %s484_s16 = sadd.s32 4294967294, %s739_s14   ;;  %s739_s14 = sphi %s775_s14, %s19_s14   ;;  %s735_s13 = sphi %s773_s13, %s975_s13   ;;  %s731_s12 = sphi %s771_s12, %s974_s12   ;;  %s727_s11 = sphi %s769_s11, %s973_s11   ;;  %s723_s10 = sphi %s767_s10, %s972_s10   ;;  %s719_s9 = sphi %s765_s9, %s971_s9  }
   0x8   : > { %p53_p0 = scmp.ne.s32.totalorder %s723_s10, %s719_s9  ;;  %p799_p1 = scmp.eq.s32.totalorder %s483_s15, 0 }
   0x9   : > { %p803_p2 = scmp.eq.s32.totalorder %s483_s15, 1  ;;  %p106_p3 = scmp.eq.s32.totalorder %s484_s16, 1 }
   0xa   : > { %p809_p4 = por %p799_p1, %p53_p0  ;;  %p485_p5 = scmp.ge.s32.totalorder %s739_s14, 1 }
   0xb   : > { %p814_p6 = por %p106_p3, %p53_p0  ;;  %p113_p7 = scmp.lt.s32.totalorder %s739_s14, 3 }
   0xc   : > { %s961_s19 = scalar_select %p809_p4, 1, 0 }
   0xd   : > { %s962_s20 = scalar_select %p814_p6, 1, 0 }
   0xe   : > { %p819_p8 = pnand %p485_p5, %p113_p7  ;;  %s741_s22 = smov [#allocation5]  }
   0xf   : > { %s125_s23 = sshll.u32 %s741_s22, 4  ;;  %s31_s25 = sadd.s32 1, %s735_s13  ;;  %s126_s23 = int_to_ptr.vmem [resolvable:$true] %s125_s23 }
  0x10   : > { %p530_p9 = pneg %p819_p8  ;;  %s612_s26 = scalar_lea.vmem %s126_s23, 512 }
  0x11   : > { %p613_p13 = scmp.ne.s32.totalorder %s126_s23, %s612_s26  ;;  %p620_p5 = scmp.lt.s32.totalorder %s126_s23, %s126_s23 }
  0x12   : > { %p828_p11 = pnand %p530_p9, %p799_p1  ;;  %p621_p7 = scmp.lt.s32.totalorder %s612_s26, %s612_s26 }
  0x14   : > { %p603_p12 = pneg %p828_p11  ;;  %p622_p6 = por %p621_p7, %p620_p5 }
  0x16   : > { %p615_p0 = pnand %p613_p13, %p603_p12 }
  0x18   : > { %p616_p3 = pneg %p615_p0 }
  0x1a   : > { %p623_p4 = pnand %p622_p6, %p616_p3 }
  0x1c   : > { %626 = shalt.err (!%p623_p4)
}
  0x1d   : > { %s742_s27 = smov 128   ;;  %s743_s28 = smov 8  }
  0x1e   : > { %533 = dma.hbm_to_vmem [thread:$0]  (!%p828_p11), %s956_s1, 512, %s126_s23, [#allocation6], %s742_s27, %s742_s27, %s743_s28  }
  0x1f   : > { %p33_p6 = scmp.ge.s32.totalorder %s31_s25, 2  ;;  %s40_s3 = sadd.s32 1, %s727_s11 }
  0x20   : > { %p47_p4 = scmp.ne.s32.totalorder %s727_s11, %s723_s10  ;;  %p48_p9 = scmp.eq.s32.totalorder %s739_s14, 0 }
  0x21   : > { %s977_s25 = smov (%p33_p6, %s31_s25), 0  ;;  %p543_p0 = scmp.lt.s32.totalorder %s739_s14, 2 }
  0x22   : > { %p846_p12 = por %p48_p9, %p47_p4  ;;  %p852_p13 = por %p803_p2, %p47_p4 }
  0x23   : > { %s35_s6 = ssub.s32 %s735_s13, %s977_s25  ;;  %s139_s7 = sand.u32 1, %s727_s11  }
  0x24   : > { %p38_p11 = scmp.eq.s32.totalorder %s35_s6, 0  ;;  %s488_s8 = sshll.u32 %s139_s7, 3 }
  0x25   : > { %s501_s16 = sshll.u32 %s735_s13, 7  ;;  %s143_s26 = scalar_lea.vmem [#allocation2], %s488_s8 }
  0x26   : > { %s861_s15 = scalar_select %p38_p11, %s727_s11, %s40_s3  }
  0x27   : > { %s150_s24 = scalar_lea.hbm %s955_s0, %s501_s16  ;;  %s151_s27 = sshll.u32 %s143_s26, 4  ;;  %s152_s27 = int_to_ptr.vmem [resolvable:$true] %s151_s27 }
  0x28   : > { %p869_p2 = pnand %p543_p0, %p846_p12  ;;  %s140_s28 = scalar_lea.sflag [#allocation3], %s139_s7 }
  0x29   : > { %s640_s29 = scalar_lea.vmem %s152_s27, 128  ;;  %s744_s30 = smov [#allocation2]  }
  0x2a   : > { %p629_p3 = pneg %p869_p2  ;;  %p641_p5 = scmp.ne.s32.totalorder %s152_s27, %s640_s29 }
  0x2b   : > { %s645_s3 = sshll.u32 %s744_s30, 4  ;;  %s646_s3 = int_to_ptr.vmem [resolvable:$false] %s645_s3 }
  0x2c   : > { %p643_p7 = pnand %p641_p5, %p629_p3  ;;  %s647_s6 = scalar_lea.vmem %s646_s3, 256 }
  0x2d   : > { %p648_p4 = scmp.lt.s32.totalorder %s152_s27, %s646_s3  ;;  %p649_p9 = scmp.lt.s32.totalorder %s647_s6, %s640_s29 }
  0x2e   : > { %p644_p6 = pneg %p643_p7 }
  0x2f   : > { %p650_p11 = por %p649_p9, %p648_p4 }
  0x31   : > { %p651_p10 = pnand %p650_p11, %p644_p6 }
  0x33   : > { %654 = shalt.err (!%p651_p10)
}
  0x34   : > { %s745_s4 = smov 32   ;;  %s746_s8 = smov 2  }
  0x35   : > { %537 = dma.hbm_to_vmem [thread:$0]  (!%p869_p2), %s150_s24, 128, %s152_s27, %s140_s28, %s745_s4, %s745_s4, %s746_s8  }
  0x36   : > { %163 = sbr.rel (%p819_p8) target bundleno = 280 (0x118), region = 28  ;;  %s880_s7 = sand.u32 (!%p819_p8), 1, %s723_s10  }
  0x37   : > { %s492_s16 = sshll.u32 (!%p819_p8), %s880_s7, 3  ;;  %s166_s22 = scalar_lea.sflag (!%p819_p8), [#allocation3], %s880_s7 }
  0x38   : > { %s884_s23 = scalar_lea.vmem (!%p819_p8), [#allocation2], %s492_s16  ;;  %p968_p12 = scmp.ne.s32.totalorder (!%p819_p8), %s961_s19, 0 }
  0x3b   : > { %706 = dma.done.wait (%p968_p12), %s166_s22, 128  }
  0x3c   : > { %708 = vsyncadd (%p968_p12), %s166_s22, 4294967168 }
  0x3d   : > { %710 = dma.done.wait (%p799_p1), [#allocation6], 512  }
  0x3e   : > { %712 = vsyncadd (%p799_p1), [#allocation6], 4294966784  ;;  %v747_v0 = vmov 0.0   ;;  %vm748_vm0 = vmmov 0   ;;  %v206_v1 = vld [vmem:[#allocation5 + $0x18] sm:$0xff]  ;;  %v199_v2 = vld [vmem:[#allocation5 + $0x8] sm:$0xff] }
  0x3f   : > { %508 = vmatprep.subr.mxu0 %v747_v0  ;;  %515 = vmatprep.subr.mxu1 %v747_v0  ;;  %v205_v3 = vld [vmem:[#allocation5 + $0x10] sm:$0xff]  ;;  %vm212_vm1 = vcmask 1041409   ;;  %v198_v4 = vld [vmem:[#allocation5] sm:$0xff]  ;;  %vm215_vm2 = vcmask 1042434   ;;  %vm218_vm3 = vcmask 1043459   ;;  %vm220_vm4 = vcmask 130048  }
  0x40   : > { %512 = vmatprep.mubr.msk.f32.mxu0 %vm748_vm0, %v747_v0  ;;  %519 = vmatprep.mubr.msk.f32.mxu1 %vm748_vm0, %v747_v0  ;;  %v200_v5 = vld [vmem:[%s884_s23 + $0x1] sm:$0x1]  ;;  %v201_v6 = vld [vmem:[%s884_s23 + $0x3] sm:$0x1]  ;;  %v202_v7 = vld [vmem:[%s884_s23 + $0x5] sm:$0x1] }
  0x41   : > { %509 = vmatpush3.msra.mxu0 %v206_v1  ;;  %516 = vmatpush3.msra.mxu1 %v199_v2  ;;  %v203_v8 = vld [vmem:[%s884_s23 + $0x7] sm:$0x1]  ;;  %v211_v9 = vrot.slane %v201_v6, 7  ;;  %v214_v10 = vrot.slane %v202_v7, 6  ;;  %v194_v12 = vld [vmem:[%s884_s23] sm:$0x1] }
  0x42   : > { %510 = vmatprep.subr.mxu0 %v747_v0  ;;  %517 = vmatprep.subr.mxu1 %v747_v0  ;;  %v217_v11 = vrot.slane %v203_v8, 5  ;;  %v195_v13 = vld [vmem:[%s884_s23 + $0x2] sm:$0x1]  ;;  %v196_v15 = vld [vmem:[%s884_s23 + $0x4] sm:$0x1]  ;;  %s494_s17 = sshll.u32 %s880_s7, 2 }
  0x43   : > { %511 = vmatpush3.msra.mxu0 %v205_v3  ;;  %518 = vmatpush3.msra.mxu1 %v198_v4  ;;  %v213_v14 = vsel %vm212_vm1, %v211_v9, %v200_v5  ;;  %v197_v16 = vld [vmem:[%s884_s23 + $0x6] sm:$0x1]  ;;  %v297_v17 = vrot.slane %v195_v13, 7  ;;  %v299_v19 = vrot.slane %v196_v15, 6  ;;  %s498_s19 = sshll.u32 %s731_s12, 6  ;;  %s193_s21 = scalar_lea.vmem [#allocation7], %s494_s17 }
  0x44   : > { %v216_v18 = vsel %vm215_vm2, %v214_v10, %v213_v14  ;;  %v301_v20 = vrot.slane %v197_v16, 5  ;;  %s392_s24 = sshll.u32 %s193_s21, 4  ;;  %vm375_vm5 = vcmask 257024   ;;  %s913_s18 = scalar_lea.hbm %s957_s2, %s498_s19  ;;  %s393_s24 = int_to_ptr.vmem [resolvable:$true] %s392_s24 }
  0x45   : > { %v219_v21 = vsel %vm218_vm3, %v217_v11, %v216_v18  ;;  %v298_v22 = vsel %vm212_vm1, %v297_v17, %v194_v12  ;;  %s378_s28 = scalar_lea.sflag [#allocation4], %s880_s7  ;;  %s655_s29 = scalar_lea.vmem %s393_s24, 64 }
  0x46   : > { %513 = vmatmul.mubr.msk.f32.vlgmr.msra.gmra.mxu0 %vm220_vm4, %v219_v21  ;;  %v300_v23 = vsel %vm215_vm2, %v299_v19, %v298_v22  ;;  %p656_p1 = scmp.ne.s32.totalorder %s393_s24, %s655_s29  ;;  %s749_s12 = smov [#allocation7]  }
  0x47   : > { %v302_v24 = vsel %vm218_vm3, %v301_v20, %v300_v23  ;;  %s659_s30 = sshll.u32 %s749_s12, 4  ;;  %s660_s30 = int_to_ptr.vmem [resolvable:$false] %s659_s30 }
  0x48   : > { %520 = vmatmul.mubr.msk.f32.vlgmr.msra.gmra.mxu1 %vm220_vm4, %v302_v24  ;;  %p657_p8 = pnand %p656_p1, %p852_p13  ;;  %s661_s3 = scalar_lea.vmem %s660_s30, 128 }
  0x49   : > { %p662_p0 = scmp.lt.s32.totalorder %s393_s24, %s660_s30  ;;  %p663_p2 = scmp.lt.s32.totalorder %s661_s3, %s655_s29 }
  0x4a   : > { %p658_p10 = pneg %p657_p8 }
  0x4b   : > { %p664_p3 = por %p663_p2, %p662_p0 }
  0x4d   : > { %p665_p5 = pnand %p664_p3, %p658_p10 }
 0x106   : > { %v289_v25 = vpop.f32.mrf.mxu0 }
 0x108   : > { %v371_v26 = vpop.f32.mrf.mxu1  ;;  %v514_v27 = vpop.f32.mrf.mxu0 }
 0x109   : > { %v372_v28 = vadd.f32 %v371_v26, %v289_v25 }
 0x10a   : > { %v521_v29 = vpop.f32.mrf.mxu1 }
 0x10b   : > { %376 = vst.msk [vmem:[%s193_s21] sm:$0xf] %vm375_vm5, %v372_v28 }
 0x10c   : > { %668 = shalt.err (!%p665_p5)
}
 0x10d   : > { %s669_s6 = scalar_lea.hbm %s913_s18, 64  ;;  %s673_s7 = scalar_lea.hbm %s957_s2, 128 }
 0x10e   : > { %p670_p7 = scmp.ne.s32.totalorder %s913_s18, %s669_s6  ;;  %p674_p9 = scmp.lt.s32.totalorder %s913_s18, %s957_s2 }
 0x10f   : > { %p675_p11 = scmp.lt.s32.totalorder %s673_s7, %s669_s6 }
 0x110   : > { %p671_p6 = pnand %p670_p7, %p852_p13 }
 0x111   : > { %p676_p12 = por %p675_p11, %p674_p9 }
 0x112   : > { %p672_p4 = pneg %p671_p6 }
 0x114   : > { %p677_p1 = pnand %p676_p12, %p672_p4 }
 0x116   : > { %680 = shalt.err (!%p677_p1)
}
 0x117   : > { %528 = dma.vmem_to_hbm [thread:$0]  (%p852_p13), %s393_s24, 64, %s913_s18, %s378_s28  }
 0x118 PF: > { %s404_s23 = sand.u32 1, %s719_s9   ;;  %p969_p8 = scmp.ne.s32.totalorder %s962_s20, 0 }
 0x119   : > { %p970_p10 = scmp.ge.s32.totalorder %s739_s14, 2  ;;  %s405_s17 = scalar_lea.sflag [#allocation4], %s404_s23 }
 0x11b   : > { %p539_p0 = pnand %p970_p10, %p969_p8 }
 0x11d   : > { %p540_p2 = pneg %p539_p0 }
 0x11f   : > { %714 = dma.done.wait (%p540_p2), %s405_s17, 64  }
 0x120   : > { %716 = vsyncadd (%p540_p2), %s405_s17, 4294967232  ;;  %s19_s14 = sadd.s32 1, %s739_s14   ;;  %s971_s9 = smov %s723_s10 }
 0x121   : > { %p16_p3 = scmp.ge.s32.totalorder %s19_s14, 4   ;;  %s972_s10 = smov %s727_s11 }
 0x122   : > { %s973_s11 = smov %s861_s15  ;;  %s974_s12 = smov %s735_s13 }
 0x123   : > { %s975_s13 = smov %s977_s25  ;;  %18 = sbr.rel (!%p16_p3) target bundleno = 7 (0x7), region = 78 }
 0x128   :  { %410 = vsyncpa [#allocation3], 1 }
 0x129   :  { %412 = vsyncpa [#allocation3 + $0x1], 1 }
 0x12a   :  { %413 = vsyncpa [#allocation6], 1 }
 0x12b   :  { %414 = vsyncpa [#allocation4], 1 }
 0x12c   :  { %416 = vsyncpa [#allocation4 + $0x1], 1 }

</bundles_post_ra>
